<compile_context>
chip_gen: v5e
topology: v5e:2x2
jax: 0.10.0
libtpu: 0.0.40
codegen_flags: <defaults>
</compile_context>

<pallas_src>
from functools import partial

import jax
import jax.numpy as jnp
import numpy as np
from jax.experimental import pallas as pl
from jax.experimental.pallas import tpu as pltpu


# ---------------------------------------------------------------------------
# helpers
# ---------------------------------------------------------------------------

def _round_up(x, m):
    return (x + m - 1) // m * m


def _image_to_patches(x, patch_size):
    """(B, C, H, W) -> (B, N, C*P*P).  torch-`unfold`-style (C, ph, pw) flatten order.
    TODO(synk): add a parity test against torch.nn.Unfold / Conv2d patchify."""
    B, C, H, W = x.shape
    P = patch_size
    hn, wn = H // P, W // P
    x = x.reshape(B, C, hn, P, wn, P)
    x = x.transpose(0, 2, 4, 1, 3, 5)            # (B, hn, wn, C, P, P)
    return x.reshape(B, hn * wn, C * P * P)      # (B, N, E)


def _vmem_capacity_bytes():
    """Physical VMEM of the local TPU generation (fallback: v7x's 64 MiB)."""
    try:
        return int(pltpu.get_tpu_info().vmem_capacity_bytes)
    except Exception:
        return 64 * 1024 * 1024


def _num_tensorcores():
    """TensorCores sharing the grid on this device (1 on v5e/v6e, 2 on v4/v5p/v7x).
    Only used to decide whether splitting the grid across cores is worth it."""
    try:
        dev = jax.devices()[0]
        for attr in ("num_cores", "core_count", "num_tensorcores"):
            v = getattr(dev, attr, None)
            if isinstance(v, int) and v > 0:
                return v
        kind = str(getattr(dev, "device_kind", "")).lower()
        if any(tok in kind for tok in ("v4", "v5p", "v7", "7x")):
            return 2
    except Exception:
        pass
    return 1


def _pick_blocks(B, T, E, itemsize, *, vmem_budget, ncores):
    """Choose (Bb, Tt) block dims.

    Tt == T  -> single batch-chunk grid axis, grid = (cdiv(B, Bb),).
    Tt <  T  -> fallback two-axis grid (B, cdiv(T, Tt)) with Bb == 1.
    Byte estimates include sublane / lane padding of the VMEM tiles.
    """
    sub = 8 * max(1, 4 // itemsize)                    # sublanes per tile at this dtype
    pad_T = _round_up(T, sub)
    pad_E = _round_up(E, 128)
    per_batch = 2 * 2 * pad_T * pad_E * itemsize       # (tokens-in + out) * double-buffer

    if per_batch <= vmem_budget:
        bb = max(1, min(B, vmem_budget // per_batch))
        if ncores >= 2 and B >= 2:
            bb = min(bb, (B + 1) // 2)                 # >= 2 steps: both TCs get work
            steps = pl.cdiv(B, bb)
            if steps > 1 and steps % 2:                # prefer an even split over 2 TCs
                bb = max(1, pl.cdiv(B, steps + 1))
        return bb, T

    # Even one (1, T, E) in+out pair does not fit: tile T on a second grid axis.
    tt = (max(1, vmem_budget // (2 * 2 * pad_E * itemsize)) // sub) * sub
    tt = max(tt, sub)
    if tt >= T:
        return 1, T
    return 1, tt


# ---------------------------------------------------------------------------
# kernel
# ---------------------------------------------------------------------------

def _add_pos_kernel(tok_ref, pos_ref, out_ref):
    # tok_ref: (Bb, Tt, E)   pos_ref: (1, Tt, E)   out_ref: (Bb, Tt, E)
    # One full-tile load per input, one VPU add, one lane-dense store.
    out_ref[...] = tok_ref[...] + pos_ref[...]


@partial(jax.jit, static_argnames=("patch_size", "fancy"))
def _forward(x, cls_token_embed, position_embed, patch_size, fancy):
    B, C, H, W = x.shape
    P = patch_size
    assert H % P == 0 and W % P == 0, (H, W, P)
    E = C * P * P
    N = (H // P) * (W // P)
    T = N + 1
    assert position_embed.shape == (1, T, E), position_embed.shape

    cls = jnp.broadcast_to(cls_token_embed.astype(x.dtype), (B, 1, E))
    pos = position_embed.astype(x.dtype)

    # Patchify + prepend cls.  Under jit this is one XLA producer fusion writing
    # `tokens` once (see the HBM-traffic note at the top of the file).
    patches = _image_to_patches(x, P)                      # (B, N, E)
    tokens = jnp.concatenate([cls, patches], axis=1)       # (B, T, E)

    itemsize = jnp.dtype(x.dtype).itemsize
    vmem_limit = int(min(_vmem_capacity_bytes() * 3 // 4, 100 * 1024 * 1024))
    ncores = _num_tensorcores()
    bb, tt = _pick_blocks(B, T, E, itemsize,
                          vmem_budget=vmem_limit // 2, ncores=ncores)

    if tt >= T:
        # Batch-chunked grid; pos has a constant index -> DMA'd once, VMEM-resident.
        pos_kwargs = dict(pipeline_mode=pl.Buffered(1)) if fancy else {}
        grid = (pl.cdiv(B, bb),)
        in_specs = [pl.BlockSpec((bb, T, E), lambda i: (i, 0, 0)),
                    pl.BlockSpec((1, T, E), lambda i: (0, 0, 0), **pos_kwargs)]
        out_spec = pl.BlockSpec((bb, T, E), lambda i: (i, 0, 0))
        dims = ("parallel",)
    else:
        # Very large T*E: tile the token axis as well (Tt is a multiple of 8).
        grid = (B, pl.cdiv(T, tt))
        in_specs = [pl.BlockSpec((1, tt, E), lambda b, t: (b, t, 0)),
                    pl.BlockSpec((1, tt, E), lambda b, t: (0, t, 0))]
        out_spec = pl.BlockSpec((1, tt, E), lambda b, t: (b, t, 0))
        dims = ("parallel", "parallel")

    cp_kwargs = dict(dimension_semantics=dims, vmem_limit_bytes=vmem_limit)
    call_kwargs = {}
    if fancy:
        cp_kwargs["allow_input_fusion"] = [True, False]    # tokens producer fusable
        call_kwargs["input_output_aliases"] = {0: 0}       # reuse tokens buffer as out

    return pl.pallas_call(
        _add_pos_kernel,
        out_shape=jax.ShapeDtypeStruct((B, T, E), x.dtype),
        grid_spec=pl.GridSpec(grid=grid, in_specs=in_specs, out_specs=out_spec),
        compiler_params=pltpu.CompilerParams(**cp_kwargs),
        **call_kwargs,
    )(tokens, pos)


def positional_encoding_embeddings(x, cls_token_embed, position_embed, patch_size):
    """Forward pass equivalent to PositionalEncodingEmbeddings.forward.

    x: (B, C, H, W); cls_token_embed: (B, 1, E) or (1, 1, E); position_embed:
    (1, N+1, E) with E = C * patch_size**2.  Returns (B, N+1, E) in x.dtype
    (pass bf16 inputs/params for ~2x on bandwidth-bound parts such as v5e).
    """
    try:
        return _forward(x, cls_token_embed, position_embed,
                        patch_size=patch_size, fancy=True)
    except Exception:
        # Conservative retry: drop single-buffered pos / io-aliasing / input-fusion
        # hints if the local jax / Mosaic build rejects any of them.
        return _forward(x, cls_token_embed, position_embed,
                        patch_size=patch_size, fancy=False)


if __name__ == "__main__":
    # Module hyper-parameters (small, consistent with the forward pass):
    #   img_size=16, patch_size=8 -> n_patches = 16**2 // 8**2 = 4
    #   channels=4               -> embedding_dim = 4 * 8 * 8 = 256 (lane-dense)
    B, C, img_size, patch_size = 2, 4, 16, 8
    E = C * patch_size * patch_size
    n_patches = img_size ** 2 // patch_size ** 2

    key = jax.random.PRNGKey(0)
    kx, kcls, kpos = jax.random.split(key, 3)

    x = jax.random.uniform(kx, (B, C, img_size, img_size), dtype=jnp.float32)
    # The PyTorch module re-creates cls_token_embed with a batch dimension on the
    # first forward, so the cls parameter carries batch size B here.
    cls_token_embed = jax.random.uniform(kcls, (B, 1, E), dtype=jnp.float32)
    position_embed = jax.random.uniform(kpos, (1, n_patches + 1, E), dtype=jnp.float32)

    out = positional_encoding_embeddings(x, cls_token_embed, position_embed,
                                         patch_size=patch_size)
    out = jax.block_until_ready(out)

    # Pure-JAX reference for correctness.
    patches_ref = _image_to_patches(x, patch_size)
    ref = jnp.concatenate([cls_token_embed, patches_ref], axis=1) + position_embed

    assert out.shape == (B, n_patches + 1, E), out.shape
    np.testing.assert_allclose(np.asarray(out), np.asarray(ref), rtol=1e-6, atol=1e-6)
    print("KERNEL_OK")
</pallas_src>

<mosaic_0001>
module attributes {stable_mosaic.version = 11 : i64} {
  func.func @_add_pos_kernel(%arg0: i32, %arg1: memref<2x5x256xf32, #tpu.memory_space<vmem>>, %arg2: memref<1x5x256xf32, #tpu.memory_space<vmem>>, %arg3: memref<2x5x256xf32, #tpu.memory_space<vmem>>) attributes {dimension_semantics = [#tpu.dimension_semantics<parallel>], iteration_bounds = array<i64: 1>, scalar_prefetch = 0 : i64, scratch_operands = 0 : i64, tpu.core_type = #tpu.core_type<tc>, window_params = [{transform_indices = @transform_0, window_bounds = array<i64: 2, 5, 256>}, {pipeline_mode = #tpu.pipeline_mode<synchronous>, transform_indices = @transform_1, window_bounds = array<i64: 1, 5, 256>}, {transform_indices = @transform_2, window_bounds = array<i64: 2, 5, 256>}]} {
    %c0 = arith.constant 0 : index
    %c0_0 = arith.constant 0 : index
    %c0_1 = arith.constant 0 : index
    %0 = vector.load %arg1[%c0, %c0_0, %c0_1] : memref<2x5x256xf32, #tpu.memory_space<vmem>>, vector<2x5x256xf32>
    %c0_2 = arith.constant 0 : index
    %c0_3 = arith.constant 0 : index
    %c0_4 = arith.constant 0 : index
    %1 = vector.load %arg2[%c0_2, %c0_3, %c0_4] : memref<1x5x256xf32, #tpu.memory_space<vmem>>, vector<1x5x256xf32>
    %2 = vector.broadcast %1 : vector<1x5x256xf32> to vector<2x5x256xf32>
    %3 = arith.addf %0, %2 : vector<2x5x256xf32>
    %c0_5 = arith.constant 0 : index
    %c0_6 = arith.constant 0 : index
    %c0_7 = arith.constant 0 : index
    %4 = vector.load %arg3[%c0_5, %c0_6, %c0_7] : memref<2x5x256xf32, #tpu.memory_space<vmem>>, vector<2x5x256xf32>
    tpu.vector_store %arg3[%c0_5, %c0_6, %c0_7], %3 {strides = array<i32>} : memref<2x5x256xf32, #tpu.memory_space<vmem>>, vector<2x5x256xf32>,
    return
  }
  func.func @transform_0(%arg0: i32) -> (i32, i32, i32) {
    %c0_i32 = arith.constant 0 : i32
    %c0_i32_0 = arith.constant 0 : i32
    %c0_i32_1 = arith.constant 0 : i32
    return %arg0, %c0_i32, %c0_i32_0 : i32, i32, i32
  }
  func.func @transform_1(%arg0: i32) -> (i32, i32, i32) {
    %c0_i32 = arith.constant 0 : i32
    %c0_i32_0 = arith.constant 0 : i32
    %c0_i32_1 = arith.constant 0 : i32
    %c0_i32_2 = arith.constant 0 : i32
    return %c0_i32, %c0_i32_0, %c0_i32_1 : i32, i32, i32
  }
  func.func @transform_2(%arg0: i32) -> (i32, i32, i32) {
    %c0_i32 = arith.constant 0 : i32
    %c0_i32_0 = arith.constant 0 : i32
    %c0_i32_1 = arith.constant 0 : i32
    return %arg0, %c0_i32, %c0_i32_0 : i32, i32, i32
  }
}

module attributes {stable_mosaic.version = 11 : i64} {
  func.func @_add_pos_kernel(%arg0: i32, %arg1: memref<2x5x256xf32, #tpu.memory_space<vmem>>, %arg2: memref<1x5x256xf32, #tpu.memory_space<vmem>>, %arg3: memref<2x5x256xf32, #tpu.memory_space<vmem>>) attributes {dimension_semantics = [#tpu.dimension_semantics<parallel>], iteration_bounds = array<i64: 1>, scalar_prefetch = 0 : i64, scratch_operands = 0 : i64, tpu.core_type = #tpu.core_type<tc>, window_params = [{transform_indices = @transform_0, window_bounds = array<i64: 2, 5, 256>}, {pipeline_mode = #tpu.pipeline_mode<synchronous>, transform_indices = @transform_1, window_bounds = array<i64: 1, 5, 256>}, {transform_indices = @transform_2, window_bounds = array<i64: 2, 5, 256>}]} {
    %c0 = arith.constant 0 : index
    %c0_0 = arith.constant 0 : index
    %c0_1 = arith.constant 0 : index
    %0 = vector.load %arg1[%c0, %c0_0, %c0_1] : memref<2x5x256xf32, #tpu.memory_space<vmem>>, vector<2x5x256xf32>
    %c0_2 = arith.constant 0 : index
    %c0_3 = arith.constant 0 : index
    %c0_4 = arith.constant 0 : index
    %1 = vector.load %arg2[%c0_2, %c0_3, %c0_4] : memref<1x5x256xf32, #tpu.memory_space<vmem>>, vector<1x5x256xf32>
    %2 = vector.broadcast %1 : vector<1x5x256xf32> to vector<2x5x256xf32>
    %3 = arith.addf %0, %2 : vector<2x5x256xf32>
    %c0_5 = arith.constant 0 : index
    %c0_6 = arith.constant 0 : index
    %c0_7 = arith.constant 0 : index
    %4 = vector.load %arg3[%c0_5, %c0_6, %c0_7] : memref<2x5x256xf32, #tpu.memory_space<vmem>>, vector<2x5x256xf32>
    tpu.vector_store %arg3[%c0_5, %c0_6, %c0_7], %3 {strides = array<i32>} : memref<2x5x256xf32, #tpu.memory_space<vmem>>, vector<2x5x256xf32>,
    return
  }
  func.func @transform_0(%arg0: i32) -> (i32, i32, i32) {
    %c0_i32 = arith.constant 0 : i32
    %c0_i32_0 = arith.constant 0 : i32
    %c0_i32_1 = arith.constant 0 : i32
    return %arg0, %c0_i32, %c0_i32_0 : i32, i32, i32
  }
  func.func @transform_1(%arg0: i32) -> (i32, i32, i32) {
    %c0_i32 = arith.constant 0 : i32
    %c0_i32_0 = arith.constant 0 : i32
    %c0_i32_1 = arith.constant 0 : i32
    %c0_i32_2 = arith.constant 0 : i32
    return %c0_i32, %c0_i32_0, %c0_i32_1 : i32, i32, i32
  }
  func.func @transform_2(%arg0: i32) -> (i32, i32, i32) {
    %c0_i32 = arith.constant 0 : i32
    %c0_i32_0 = arith.constant 0 : i32
    %c0_i32_1 = arith.constant 0 : i32
    return %arg0, %c0_i32, %c0_i32_0 : i32, i32, i32
  }
}

</mosaic_0001>

<bundles_post_ra>
// kernel: _forward.2
= control target key start
LH: loop header
LB: loop body
LE: loop exit
PB: predicated region body
PF: predicated region fallthrough
CT: control target
= control target key end

     0   :  { %s272_s0 = inlined_call_operand.vmem [shape: f32[1,5,256], index: 0, kind: input, shape index: {}]   ;;  %s273_s1 = inlined_call_operand.vmem [shape: f32[2,4,256], index: 1, kind: input, shape index: {}]   ;;  %s274_s2 = inlined_call_operand.<no memory space> [shape: f32[], index: 2, kind: input, shape index: {}]   ;;  %s275_s3 = inlined_call_operand.vmem [shape: f32[2,1,256], index: 3, kind: input, shape index: {}]   ;;  %s276_s4 = inlined_call_operand.vmem [shape: f32[2,5,256], index: 4, kind: output, shape index: {}]  }
   0x1   :  { %v9_v0 = vstv %s274_s2 }
   0x2   :  { %v58_v1 = vlaneseq  ;;  %v57_v2 = vld [vmem:[%s273_s1] sm:$0xf]  ;;  %v196_v5 = vld [vmem:[%s273_s1 + $0x4] sm:$0xf]  ;;  %v198_v10 = vld [vmem:[%s273_s1 + $0x8] sm:$0xf] }
   0x3   :  { %v66_v4 = vld [vmem:[%s275_s3] sm:$0x1]  ;;  %v197_v6 = vld [vmem:[%s275_s3 + $0x1] sm:$0x1]  ;;  %v199_v7 = vld [vmem:[%s275_s3 + $0x2] sm:$0x1] }
   0x4   :  { %v59_v3 = vshrl.u32 %v58_v1, 7  ;;  %v201_v8 = vld [vmem:[%s275_s3 + $0x3] sm:$0x1]  ;;  %v200_v11 = vld [vmem:[%s273_s1 + $0xc] sm:$0xf]  ;;  %vm63_vm1 = vcmask 1046528  }
   0x5   :  { %v176_v32 = vld [vmem:[%s272_s0] sm:$0x1f]  ;;  %v177_v33 = vld [vmem:[%s272_s0 + $0x8] sm:$0x1f] }
   0x6   :  { %v60_v9 = vadd.s32 8, %v59_v3  ;;  %vm70_vm0 = vcmp.lt.s32.totalorder %v59_v3, 1 }
   0x7   :  { %v71_v12 = vsel %vm70_vm0, %v66_v4, %v9_v0  ;;  %v101_v13 = vsel %vm70_vm0, %v197_v6, %v9_v0  ;;  %v132_v14 = vsel %vm70_vm0, %v199_v7, %v9_v0  ;;  %v163_v15 = vsel %vm70_vm0, %v201_v8, %v9_v0 }
   0x8   :  { %vm61_vm2 = vcmp.lt.s32.totalorder %v60_v9, 12 }
   0x9   :  { %v62_v16 = vsel %vm61_vm2, %v57_v2, %v9_v0  ;;  %v91_v17 = vsel %vm61_vm2, %v196_v5, %v9_v0  ;;  %v122_v18 = vsel %vm61_vm2, %v198_v10, %v9_v0  ;;  %v153_v19 = vsel %vm61_vm2, %v200_v11, %v9_v0 }
   0xa   :  { %v64_v20 = vsel %vm63_vm1, %v62_v16, %v9_v0  ;;  %v93_v21 = vsel %vm63_vm1, %v91_v17, %v9_v0  ;;  %v124_v22 = vsel %vm63_vm1, %v122_v18, %v9_v0  ;;  %v155_v23 = vsel %vm63_vm1, %v153_v19, %v9_v0 }
   0xb   :  { %v65_v24 = vrot.slane %v64_v20, 7  ;;  %v94_v25 = vrot.slane %v93_v21, 7  ;;  %v125_v26 = vrot.slane %v124_v22, 7  ;;  %v156_v27 = vrot.slane %v155_v23, 7 }
   0xd   :  { %v74_v28 = vmax.f32 %v71_v12, %v65_v24  ;;  %v104_v29 = vmax.f32 %v101_v13, %v94_v25  ;;  %v135_v30 = vmax.f32 %v132_v14, %v125_v26  ;;  %v166_v31 = vmax.f32 %v163_v15, %v156_v27 }
   0xf   :  { %78 = vst [vmem:[#allocation12 + $0x10] sm:$0xff] %v74_v28 }
  0x10   :  { %109 = vst [vmem:[#allocation12] sm:$0xff] %v104_v29 }
  0x11   :  { %140 = vst [vmem:[#allocation12 + $0x18] sm:$0xff] %v135_v30 }
  0x12   :  { %171 = vst [vmem:[#allocation12 + $0x8] sm:$0xff] %v166_v31 }
  0x16   :  { %v172_v34 = vld [vmem:[#allocation12 + $0x10] sm:$0x1f] }
  0x17   :  { %v173_v35 = vld [vmem:[#allocation12] sm:$0x1f]  ;;  %v178_v36 = vadd.f32 %v176_v32, %v172_v34 }
  0x18   :  { %v174_v37 = vld [vmem:[#allocation12 + $0x18] sm:$0x1f]  ;;  %v179_v38 = vadd.f32 %v177_v33, %v173_v35 }
  0x19   :  { %v175_v39 = vld [vmem:[#allocation12 + $0x8] sm:$0x1f]  ;;  %v180_v40 = vadd.f32 %v176_v32, %v174_v37  ;;  %182 = vst [vmem:[%s276_s4] sm:$0x1f] %v178_v36 }
  0x1a   :  { %v181_v41 = vadd.f32 %v177_v33, %v175_v39  ;;  %183 = vst [vmem:[%s276_s4 + $0x8] sm:$0x1f] %v179_v38 }
  0x1b   :  { %184 = vst [vmem:[%s276_s4 + $0x10] sm:$0x1f] %v180_v40 }
  0x1c   :  { %185 = vst [vmem:[%s276_s4 + $0x18] sm:$0x1f] %v181_v41 }

// kernel: _forward.1
= control target key start
LH: loop header
LB: loop body
LE: loop exit
PB: predicated region body
PF: predicated region fallthrough
CT: control target
= control target key end

     0   :  { %s74_s0 = inlined_call_operand.vmem [shape: f32[2,5,256], index: 0, kind: input, shape index: {}]   ;;  %s75_s1 = inlined_call_operand.vmem [shape: f32[1,5,256], index: 1, kind: input, shape index: {}]   ;;  %s76_s2 = inlined_call_operand.vmem [shape: f32[2,5,256], index: 2, kind: output, shape index: {}]  }
   0x1   :  { %v11_v0 = vld [vmem:[%s74_s0] sm:$0x1f]  ;;  %v12_v2 = vld [vmem:[%s74_s0 + $0x8] sm:$0x1f]  ;;  %v13_v5 = vld [vmem:[%s74_s0 + $0x10] sm:$0x1f] }
   0x2   :  { %v15_v1 = vld [vmem:[%s75_s1] sm:$0x1f]  ;;  %v16_v4 = vld [vmem:[%s75_s1 + $0x8] sm:$0x1f]  ;;  %v14_v6 = vld [vmem:[%s74_s0 + $0x18] sm:$0x1f] }
   0x3   :  { %v17_v3 = vadd.f32 %v15_v1, %v11_v0  ;;  %v18_v7 = vadd.f32 %v16_v4, %v12_v2  ;;  %v19_v8 = vadd.f32 %v15_v1, %v13_v5  ;;  %v20_v9 = vadd.f32 %v16_v4, %v14_v6 }
   0x5   :  { %21 = vst [vmem:[%s76_s2] sm:$0x1f] %v17_v3 }
   0x6   :  { %22 = vst [vmem:[%s76_s2 + $0x8] sm:$0x1f] %v18_v7 }
   0x7   :  { %23 = vst [vmem:[%s76_s2 + $0x10] sm:$0x1f] %v19_v8 }
   0x8   :  { %24 = vst [vmem:[%s76_s2 + $0x18] sm:$0x1f] %v20_v9 }

</bundles_post_ra>
